<compile_context>
chip_gen: v7x
topology: tpu7x:2x2x1
jax: 0.10.0
libtpu: 0.0.40
codegen_flags: <defaults>
</compile_context>

<pallas_src>
import math

import jax
import jax.numpy as jnp
from jax import lax
from jax.experimental import pallas as pl
from jax.experimental.pallas import tpu as pltpu


def _leaky_relu(x, negative_slope=0.01):
    return jnp.where(x > 0, x, negative_slope * x)


def critic_kernel(a_ref, s_ref, w1a_ref, w1s_ref, b1_ref, w2_ref, b2_ref,
                  w3_ref, b3_ref, o_ref):
    # Streamed activations arrive in their producer dtype (f32); cast to bf16
    # in-kernel right before the MXU dots.
    a = a_ref[...].astype(jnp.bfloat16)
    s = s_ref[...].astype(jnp.bfloat16)

    # ---- Layer 1: fused "concat" as a split matmul (bf16 MXU, f32 acc) ----
    h = (jnp.dot(a, w1a_ref[...], preferred_element_type=jnp.float32)
         + jnp.dot(s, w1s_ref[...], preferred_element_type=jnp.float32)
         + b1_ref[...])
    h = _leaky_relu(h)                                   # f32 VPU

    # ---- Layer 2 ----
    h = (jnp.dot(h.astype(jnp.bfloat16), w2_ref[...],
                 preferred_element_type=jnp.float32) + b2_ref[...])
    h = _leaky_relu(h)                                   # f32 (TB, H2)

    # ---- Layer 3: (1, H2) x (TB, H2)^T -> lane-dense (1, TB) row ----------
    # bf16 operands (avoids multi-pass f32 MXU emulation), f32 accumulation.
    q = lax.dot_general(w3_ref[...], h.astype(jnp.bfloat16),
                        (((1,), (1,)), ((), ())),
                        preferred_element_type=jnp.float32)
    o_ref[...] = (q + b3_ref[0]).astype(o_ref.dtype)


def _round_up(x, m):
    return ((x + m - 1) // m) * m


def critic_forward(all_states, action_collections, params, *, batch_tile=4096):
    """all_states: [B, num_agents, state_size]
       action_collections: [B, num_agents, action_size]
       returns q: [B, 1] (float32)
    """
    B = all_states.shape[0]
    a = action_collections.reshape(B, -1)     # [B, A]  (trivial reshape, no copy)
    s = all_states.reshape(B, -1)             # [B, S]
    w1a, w1s, b1, w2, b2, w3, b3 = params

    A = a.shape[1]
    S = s.shape[1]
    H1 = w1a.shape[1]
    H2 = w2.shape[1]

    # ---- Batch tile selection -------------------------------------------
    MIN_TB = 128                               # lane width: unmasked (1,TB) stores
    max_tile = max(int(batch_tile), MIN_TB)

    if B <= 2 * MIN_TB:
        # Small batch: single block covering the full arrays (block dims equal
        # to the array dims are always legal) -> no padding, no masking.
        TB = B
    else:
        # Balanced tiles, >=2 so both v7x TensorCores get work on the
        # "parallel" grid axis; TB a multiple of 128.  Last tile may overhang
        # B; Pallas handles the partial block and we only use columns [:B].
        num_tiles = max(int(pl.cdiv(B, max_tile)), 2)
        TB = _round_up(int(pl.cdiv(B, num_tiles)), MIN_TB)
    num_tiles = int(pl.cdiv(B, TB))

    cp_kwargs = dict(dimension_semantics=("parallel",))
    if TB > 8192:
        # Only relevant if the tile is pushed very large (v5e default scoped
        # VMEM is 16 MiB); defaults (<=4096 rows) never trigger this.
        cp_kwargs["vmem_limit_bytes"] = 64 * 1024 * 1024

    const2d = lambda i: (0, 0)   # resident (never re-DMA'd) operands

    out = pl.pallas_call(
        critic_kernel,
        out_shape=jax.ShapeDtypeStruct((1, B), jnp.float32),
        grid=(num_tiles,),
        in_specs=[
            pl.BlockSpec((TB, A), lambda i: (i, 0)),     # actions tile (streams, f32)
            pl.BlockSpec((TB, S), lambda i: (i, 0)),     # states tile  (streams, f32)
            pl.BlockSpec((A, H1), const2d),              # W1_a   (resident, bf16)
            pl.BlockSpec((S, H1), const2d),              # W1_s   (resident, bf16)
            pl.BlockSpec((1, H1), const2d),              # b1     (resident, f32)
            pl.BlockSpec((H1, H2), const2d),             # W2     (resident, bf16)
            pl.BlockSpec((1, H2), const2d),              # b2     (resident, f32)
            pl.BlockSpec((1, H2), const2d),              # W3 row (resident, bf16)
            pl.BlockSpec(memory_space=pltpu.MemorySpace.SMEM),   # b3 scalar
        ],
        out_specs=pl.BlockSpec((1, TB), lambda i: (0, i)),       # lane-dense row
        compiler_params=pltpu.CompilerParams(**cp_kwargs),
    )(a, s,
      w1a.astype(jnp.bfloat16), w1s.astype(jnp.bfloat16), b1,
      w2.astype(jnp.bfloat16), b2, w3.astype(jnp.bfloat16), b3)

    return out.reshape(B, 1)


def init_critic_params(key, state_size, action_size, num_agents=2,
                       fc1_units=64, fc2_units=64):
    """Synthetic init mirroring the module: xavier_normal weights, PyTorch
    default uniform biases. W1 is stored pre-split into (actions, states)
    halves and all weights are pre-transposed to (in, out)."""
    a_dim = action_size * num_agents
    s_dim = state_size * num_agents
    in_dim = a_dim + s_dim

    key, k1, k2, k3, kb1, kb2, kb3 = jax.random.split(key, 7)

    std1 = math.sqrt(2.0 / (in_dim + fc1_units))
    w1 = std1 * jax.random.normal(k1, (in_dim, fc1_units), dtype=jnp.float32)
    w1a, w1s = w1[:a_dim], w1[a_dim:]

    std2 = math.sqrt(2.0 / (fc1_units + fc2_units))
    w2 = std2 * jax.random.normal(k2, (fc1_units, fc2_units), dtype=jnp.float32)

    std3 = math.sqrt(2.0 / (fc2_units + 1))
    w3 = std3 * jax.random.normal(k3, (1, fc2_units), dtype=jnp.float32)  # row form

    lim1 = 1.0 / math.sqrt(in_dim)
    b1 = jax.random.uniform(kb1, (1, fc1_units), minval=-lim1, maxval=lim1,
                            dtype=jnp.float32)
    lim2 = 1.0 / math.sqrt(fc1_units)
    b2 = jax.random.uniform(kb2, (1, fc2_units), minval=-lim2, maxval=lim2,
                            dtype=jnp.float32)
    lim3 = 1.0 / math.sqrt(fc2_units)
    b3 = jax.random.uniform(kb3, (1,), minval=-lim3, maxval=lim3,
                            dtype=jnp.float32)
    return (w1a, w1s, b1, w2, b2, w3, b3)


def critic_reference(all_states, action_collections, params):
    """Pure-JAX reference that mirrors the kernel's bf16 quantization points."""
    B = all_states.shape[0]
    a = action_collections.reshape(B, -1).astype(jnp.bfloat16)
    s = all_states.reshape(B, -1).astype(jnp.bfloat16)
    w1a, w1s, b1, w2, b2, w3, b3 = params
    h = (jnp.dot(a, w1a.astype(jnp.bfloat16), preferred_element_type=jnp.float32)
         + jnp.dot(s, w1s.astype(jnp.bfloat16), preferred_element_type=jnp.float32)
         + b1)
    h = jax.nn.leaky_relu(h, negative_slope=0.01)
    h = (jnp.dot(h.astype(jnp.bfloat16), w2.astype(jnp.bfloat16),
                 preferred_element_type=jnp.float32) + b2)
    h = jax.nn.leaky_relu(h, negative_slope=0.01)
    return (jnp.dot(h.astype(jnp.bfloat16), w3.astype(jnp.bfloat16).T,
                    preferred_element_type=jnp.float32) + b3)


if __name__ == "__main__":
    num_agents, state_size, action_size = 2, 24, 2
    key = jax.random.PRNGKey(0)
    k_s, k_a, k_p = jax.random.split(key, 3)
    params = init_critic_params(k_p, state_size, action_size, num_agents)

    # --- small single-tile case (batch=8): full-array block, no padding ---
    batch = 8
    all_states = jax.random.normal(
        k_s, (batch, num_agents, state_size), dtype=jnp.float32)
    action_collections = jax.random.normal(
        k_a, (batch, num_agents, action_size), dtype=jnp.float32)

    q = critic_forward(all_states, action_collections, params)
    q = jax.block_until_ready(q)
    q_ref = critic_reference(all_states, action_collections, params)
    assert q.shape == (batch, 1)
    assert jnp.allclose(q, q_ref, atol=2e-3, rtol=2e-3)

    # --- multi-tile case: 2 balanced 384-row tiles, clamped last block ---
    batch2 = 600
    k_s2, k_a2 = jax.random.split(jax.random.PRNGKey(1), 2)
    all_states2 = jax.random.normal(
        k_s2, (batch2, num_agents, state_size), dtype=jnp.float32)
    action_collections2 = jax.random.normal(
        k_a2, (batch2, num_agents, action_size), dtype=jnp.float32)

    q2 = critic_forward(all_states2, action_collections2, params)
    q2 = jax.block_until_ready(q2)
    q2_ref = critic_reference(all_states2, action_collections2, params)
    assert q2.shape == (batch2, 1)
    assert jnp.allclose(q2, q2_ref, atol=2e-3, rtol=2e-3)

    print("KERNEL_OK")
</pallas_src>

<mosaic_0001>
module attributes {stable_mosaic.version = 11 : i64} {
  func.func @critic_kernel(%arg0: i32, %arg1: memref<8x4xf32, #tpu.memory_space<vmem>>, %arg2: memref<8x48xf32, #tpu.memory_space<vmem>>, %arg3: memref<4x64xbf16, #tpu.memory_space<vmem>>, %arg4: memref<48x64xbf16, #tpu.memory_space<vmem>>, %arg5: memref<1x64xf32, #tpu.memory_space<vmem>>, %arg6: memref<64x64xbf16, #tpu.memory_space<vmem>>, %arg7: memref<1x64xf32, #tpu.memory_space<vmem>>, %arg8: memref<1x64xbf16, #tpu.memory_space<vmem>>, %arg9: memref<1xf32, #tpu.memory_space<smem>>, %arg10: memref<1x8xf32, #tpu.memory_space<vmem>>) attributes {dimension_semantics = [#tpu.dimension_semantics<parallel>], iteration_bounds = array<i64: 1>, scalar_prefetch = 0 : i64, scratch_operands = 0 : i64, tpu.core_type = #tpu.core_type<tc>, window_params = [{transform_indices = @transform_0, window_bounds = array<i64: 8, 4>}, {transform_indices = @transform_1, window_bounds = array<i64: 8, 48>}, {pipeline_mode = #tpu.pipeline_mode<synchronous>, transform_indices = @transform_2, window_bounds = array<i64: 4, 64>}, {pipeline_mode = #tpu.pipeline_mode<synchronous>, transform_indices = @transform_3, window_bounds = array<i64: 48, 64>}, {pipeline_mode = #tpu.pipeline_mode<synchronous>, transform_indices = @transform_4, window_bounds = array<i64: 1, 64>}, {pipeline_mode = #tpu.pipeline_mode<synchronous>, transform_indices = @transform_5, window_bounds = array<i64: 64, 64>}, {pipeline_mode = #tpu.pipeline_mode<synchronous>, transform_indices = @transform_6, window_bounds = array<i64: 1, 64>}, {pipeline_mode = #tpu.pipeline_mode<synchronous>, transform_indices = @transform_7, window_bounds = array<i64: 1, 64>}, {transform_indices = @transform_8, window_bounds = array<i64: 1>}, {transform_indices = @transform_9, window_bounds = array<i64: 1, 8>}]} {
    %c0 = arith.constant 0 : index
    %c0_0 = arith.constant 0 : index
    %0 = vector.load %arg1[%c0, %c0_0] : memref<8x4xf32, #tpu.memory_space<vmem>>, vector<8x4xf32>
    %1 = arith.truncf %0 : vector<8x4xf32> to vector<8x4xbf16>
    %c0_1 = arith.constant 0 : index
    %c0_2 = arith.constant 0 : index
    %2 = vector.load %arg2[%c0_1, %c0_2] : memref<8x48xf32, #tpu.memory_space<vmem>>, vector<8x48xf32>
    %3 = arith.truncf %2 : vector<8x48xf32> to vector<8x48xbf16>
    %c0_3 = arith.constant 0 : index
    %c0_4 = arith.constant 0 : index
    %4 = vector.load %arg3[%c0_3, %c0_4] : memref<4x64xbf16, #tpu.memory_space<vmem>>, vector<4x64xbf16>
    %cst = arith.constant dense<0.000000e+00> : vector<8x64xf32>
    %5 = tpu.matmul %1, %4, %cst {dimension_numbers = #tpu.dot_dimension_numbers<[1], [0], [0], [1], [0, 0, 1, 1], [], []>} : vector<8x4xbf16>, vector<4x64xbf16>, vector<8x64xf32> -> vector<8x64xf32>
    %c0_5 = arith.constant 0 : index
    %c0_6 = arith.constant 0 : index
    %6 = vector.load %arg4[%c0_5, %c0_6] : memref<48x64xbf16, #tpu.memory_space<vmem>>, vector<48x64xbf16>
    %cst_7 = arith.constant dense<0.000000e+00> : vector<8x64xf32>
    %7 = tpu.matmul %3, %6, %cst_7 {dimension_numbers = #tpu.dot_dimension_numbers<[1], [0], [0], [1], [0, 0, 1, 1], [], []>} : vector<8x48xbf16>, vector<48x64xbf16>, vector<8x64xf32> -> vector<8x64xf32>
    %8 = arith.addf %5, %7 : vector<8x64xf32>
    %c0_8 = arith.constant 0 : index
    %c0_9 = arith.constant 0 : index
    %9 = vector.load %arg5[%c0_8, %c0_9] : memref<1x64xf32, #tpu.memory_space<vmem>>, vector<1x64xf32>
    %10 = vector.broadcast %9 : vector<1x64xf32> to vector<8x64xf32>
    %11 = arith.addf %8, %10 : vector<8x64xf32>
    %cst_10 = arith.constant 0.000000e+00 : f32
    %12 = vector.broadcast %cst_10 : f32 to vector<8x64xf32>
    %13 = arith.cmpf ogt, %11, %12 : vector<8x64xf32>
    %cst_11 = arith.constant 0.00999999977 : f32
    %14 = vector.broadcast %cst_11 : f32 to vector<8x64xf32>
    %15 = arith.mulf %14, %11 : vector<8x64xf32>
    %16 = arith.select %13, %11, %15 : vector<8x64xi1>, vector<8x64xf32>
    %17 = arith.truncf %16 : vector<8x64xf32> to vector<8x64xbf16>
    %c0_12 = arith.constant 0 : index
    %c0_13 = arith.constant 0 : index
    %18 = vector.load %arg6[%c0_12, %c0_13] : memref<64x64xbf16, #tpu.memory_space<vmem>>, vector<64x64xbf16>
    %cst_14 = arith.constant dense<0.000000e+00> : vector<8x64xf32>
    %19 = tpu.matmul %17, %18, %cst_14 {dimension_numbers = #tpu.dot_dimension_numbers<[1], [0], [0], [1], [0, 0, 1, 1], [], []>} : vector<8x64xbf16>, vector<64x64xbf16>, vector<8x64xf32> -> vector<8x64xf32>
    %c0_15 = arith.constant 0 : index
    %c0_16 = arith.constant 0 : index
    %20 = vector.load %arg7[%c0_15, %c0_16] : memref<1x64xf32, #tpu.memory_space<vmem>>, vector<1x64xf32>
    %21 = vector.broadcast %20 : vector<1x64xf32> to vector<8x64xf32>
    %22 = arith.addf %19, %21 : vector<8x64xf32>
    %cst_17 = arith.constant 0.000000e+00 : f32
    %23 = vector.broadcast %cst_17 : f32 to vector<8x64xf32>
    %24 = arith.cmpf ogt, %22, %23 : vector<8x64xf32>
    %cst_18 = arith.constant 0.00999999977 : f32
    %25 = vector.broadcast %cst_18 : f32 to vector<8x64xf32>
    %26 = arith.mulf %25, %22 : vector<8x64xf32>
    %27 = arith.select %24, %22, %26 : vector<8x64xi1>, vector<8x64xf32>
    %c0_19 = arith.constant 0 : index
    %c0_20 = arith.constant 0 : index
    %28 = vector.load %arg8[%c0_19, %c0_20] : memref<1x64xbf16, #tpu.memory_space<vmem>>, vector<1x64xbf16>
    %29 = arith.truncf %27 : vector<8x64xf32> to vector<8x64xbf16>
    %cst_21 = arith.constant dense<0.000000e+00> : vector<1x8xf32>
    %30 = tpu.matmul %28, %29, %cst_21 {dimension_numbers = #tpu.dot_dimension_numbers<[1], [1], [0], [0], [0, 0, 1, 0], [], []>} : vector<1x64xbf16>, vector<8x64xbf16>, vector<1x8xf32> -> vector<1x8xf32>
    %c0_22 = arith.constant 0 : index
    %31 = memref.load %arg9[%c0_22] : memref<1xf32, #tpu.memory_space<smem>>
    %32 = vector.broadcast %31 : f32 to vector<1x8xf32>
    %33 = arith.addf %30, %32 : vector<1x8xf32>
    %c0_23 = arith.constant 0 : index
    %c0_24 = arith.constant 0 : index
    %34 = vector.load %arg10[%c0_23, %c0_24] : memref<1x8xf32, #tpu.memory_space<vmem>>, vector<1x8xf32>
    tpu.vector_store %arg10[%c0_23, %c0_24], %33 {strides = array<i32>} : memref<1x8xf32, #tpu.memory_space<vmem>>, vector<1x8xf32>,
    return
  }
  func.func @transform_0(%arg0: i32) -> (i32, i32) {
    %c0_i32 = arith.constant 0 : i32
    %c0_i32_0 = arith.constant 0 : i32
    return %arg0, %c0_i32 : i32, i32
  }
  func.func @transform_1(%arg0: i32) -> (i32, i32) {
    %c0_i32 = arith.constant 0 : i32
    %c0_i32_0 = arith.constant 0 : i32
    return %arg0, %c0_i32 : i32, i32
  }
  func.func @transform_2(%arg0: i32) -> (i32, i32) {
    %c0_i32 = arith.constant 0 : i32
    %c0_i32_0 = arith.constant 0 : i32
    %c0_i32_1 = arith.constant 0 : i32
    return %c0_i32, %c0_i32_0 : i32, i32
  }
  func.func @transform_3(%arg0: i32) -> (i32, i32) {
    %c0_i32 = arith.constant 0 : i32
    %c0_i32_0 = arith.constant 0 : i32
    %c0_i32_1 = arith.constant 0 : i32
    return %c0_i32, %c0_i32_0 : i32, i32
  }
  func.func @transform_4(%arg0: i32) -> (i32, i32) {
    %c0_i32 = arith.constant 0 : i32
    %c0_i32_0 = arith.constant 0 : i32
    %c0_i32_1 = arith.constant 0 : i32
    return %c0_i32, %c0_i32_0 : i32, i32
  }
  func.func @transform_5(%arg0: i32) -> (i32, i32) {
    %c0_i32 = arith.constant 0 : i32
    %c0_i32_0 = arith.constant 0 : i32
    %c0_i32_1 = arith.constant 0 : i32
    return %c0_i32, %c0_i32_0 : i32, i32
  }
  func.func @transform_6(%arg0: i32) -> (i32, i32) {
    %c0_i32 = arith.constant 0 : i32
    %c0_i32_0 = arith.constant 0 : i32
    %c0_i32_1 = arith.constant 0 : i32
    return %c0_i32, %c0_i32_0 : i32, i32
  }
  func.func @transform_7(%arg0: i32) -> (i32, i32) {
    %c0_i32 = arith.constant 0 : i32
    %c0_i32_0 = arith.constant 0 : i32
    %c0_i32_1 = arith.constant 0 : i32
    return %c0_i32, %c0_i32_0 : i32, i32
  }
  func.func @transform_8(%arg0: i32) -> i32 {
    %c0_i32 = arith.constant 0 : i32
    %c0_i32_0 = arith.constant 0 : i32
    return %c0_i32 : i32
  }
  func.func @transform_9(%arg0: i32) -> (i32, i32) {
    %c0_i32 = arith.constant 0 : i32
    %c0_i32_0 = arith.constant 0 : i32
    return %c0_i32, %arg0 : i32, i32
  }
}

</mosaic_0001>

<bundles_post_ra>
// kernel: tpu_custom_call.1
= control target key start
LH: loop header
LB: loop body
LE: loop exit
PB: predicated region body
PF: predicated region fallthrough
CT: control target
= control target key end

     0   :  { %15 = vsyncpa [#allocation4], 0  ;;  %s668_s0 = inlined_call_operand.vmem [shape: f32[8,4], index: 0, kind: input, shape index: {}]   ;;  %s669_s1 = inlined_call_operand.hbm [shape: f32[8,48], index: 1, kind: input, shape index: {}]   ;;  %s670_s2 = inlined_call_operand.vmem [shape: bf16[4,64], index: 2, kind: input, shape index: {}]   ;;  %s671_s3 = inlined_call_operand.hbm [shape: bf16[48,64], index: 3, kind: input, shape index: {}]   ;;  %s672_s4 = inlined_call_operand.hbm [shape: f32[1,64], index: 4, kind: input, shape index: {}]   ;;  %s673_s5 = inlined_call_operand.vmem [shape: bf16[64,64], index: 5, kind: input, shape index: {}]   ;;  %s674_s6 = inlined_call_operand.vmem [shape: f32[1,64], index: 6, kind: input, shape index: {}]   ;;  %s675_s7 = inlined_call_operand.vmem [shape: bf16[1,64], index: 7, kind: input, shape index: {}]   ;;  %s676_s8 = inlined_call_operand.<no memory space> [shape: f32[1], index: 8, kind: input, shape index: {}]   ;;  %s677_s9 = inlined_call_operand.hbm [shape: f32[1,8], index: 9, kind: output, shape index: {}]  }
   0x1   :  { %16 = vsyncpa [#allocation7], 0 }
   0x2   :  { %17 = vsyncpa [#allocation5], 0  ;;  %s528_s30 = smov [#allocation6]   ;;  %s434_s13 = scalar_lea.hbm %s671_s3, 384 }
   0x3   :  { %s37_s10 = sshll.u32 %s528_s30, 4  ;;  %p435_p0 = scmp.ne.s32.totalorder %s671_s3, %s434_s13  ;;  %s38_s10 = int_to_ptr.vmem [resolvable:$true] %s37_s10 }
   0x4   :  { %p438_p1 = scmp.lt.u32.totalorder %s434_s13, %s671_s3 }
   0x6   :  { %p440_p2 = pnand %p438_p1, %p435_p0 }
   0x8   :  { %443 = shalt.err (!%p440_p2)
}
   0x9   :  { %s444_s18 = scalar_lea.vmem %s38_s10, 384  ;;  %p449_p4 = scmp.lt.s32.totalorder %s38_s10, %s38_s10 }
   0xa   :  { %p445_p3 = scmp.ne.s32.totalorder %s38_s10, %s444_s18  ;;  %p450_p5 = scmp.lt.s32.totalorder %s444_s18, %s444_s18 }
   0xc   :  { %p451_p6 = por %p450_p5, %p449_p4 }
   0xe   :  { %p452_p7 = pnand %p451_p6, %p445_p3 }
  0x10   :  { %455 = shalt.err (!%p452_p7)
}
  0x11   :  { %s529_s19 = smov 64   ;;  %s530_s20 = smov 4  }
  0x12   :  { %43 = dma.hbm_to_vmem [thread:$0]  %s671_s3, 384, %s38_s10, [#allocation7], %s529_s19, %s529_s19, %s530_s20  }
  0x13   :  { %s531_s23 = smov [#allocation3]   ;;  %s532_s25 = smov [#allocation8]  }
  0x14   :  { %s26_s24 = sshll.u32 %s531_s23, 4  ;;  %s50_s26 = sshll.u32 %s532_s25, 4  ;;  %s27_s24 = int_to_ptr.vmem [resolvable:$true] %s26_s24  ;;  %s51_s26 = int_to_ptr.vmem [resolvable:$true] %s50_s26 }
  0x15   :  { %s456_s29 = scalar_lea.hbm %s669_s1, 128 }
  0x16   :  { %p457_p8 = scmp.ne.s32.totalorder %s669_s1, %s456_s29  ;;  %p460_p9 = scmp.lt.u32.totalorder %s456_s29, %s669_s1 }
  0x18   :  { %p462_p10 = pnand %p460_p9, %p457_p8 }
  0x1a   :  { %465 = shalt.err (!%p462_p10)
}
  0x1b   :  { %s466_s3 = scalar_lea.vmem %s27_s24, 128  ;;  %p471_p12 = scmp.lt.s32.totalorder %s27_s24, %s27_s24 }
  0x1c   :  { %p467_p11 = scmp.ne.s32.totalorder %s27_s24, %s466_s3  ;;  %p472_p13 = scmp.lt.s32.totalorder %s466_s3, %s466_s3 }
  0x1e   :  { %p473_p0 = por %p472_p13, %p471_p12 }
  0x20   :  { %p474_p1 = pnand %p473_p0, %p467_p11 }
  0x22   :  { %477 = shalt.err (!%p474_p1)
}
  0x23   :  { %29 = dma.hbm_to_vmem [thread:$0]  %s669_s1, 128, %s27_s24, [#allocation4]  }
  0x24   :  { %s478_s17 = scalar_lea.hbm %s672_s4, 16 }
  0x25   :  { %p479_p2 = scmp.ne.s32.totalorder %s672_s4, %s478_s17  ;;  %p482_p3 = scmp.lt.u32.totalorder %s478_s17, %s672_s4 }
  0x27   :  { %p484_p4 = pnand %p482_p3, %p479_p2 }
  0x29   :  { %487 = shalt.err (!%p484_p4)
}
  0x2a   :  { %s488_s22 = scalar_lea.vmem %s51_s26, 16  ;;  %s492_s23 = scalar_lea.vmem %s51_s26, 32 }
  0x2b   :  { %p489_p5 = scmp.ne.s32.totalorder %s51_s26, %s488_s22  ;;  %p493_p6 = scmp.lt.s32.totalorder %s51_s26, %s51_s26 }
  0x2c   :  { %p494_p7 = scmp.lt.s32.totalorder %s492_s23, %s488_s22 }
  0x2e   :  { %p495_p8 = por %p494_p7, %p493_p6 }
  0x30   :  { %p496_p9 = pnand %p495_p8, %p489_p5 }
  0x32   :  { %499 = shalt.err (!%p496_p9)
}
  0x33   :  { %53 = dma.hbm_to_vmem [thread:$0]  %s672_s4, 16, %s51_s26, [#allocation7]  }
  0x34   :  { %522 = dma.done.wait [#allocation4], 128  }
  0x35   :  { %523 = vsyncadd [#allocation4], 4294967168 }
  0x36   :  { %524 = dma.done.wait [#allocation7], 400  }
  0x37   :  { %525 = vsyncadd [#allocation7], 4294966896  ;;  %v533_v0 = vmov 0.0   ;;  %vm534_vm0 = vmmov 0   ;;  %v427_v1 = vld [vmem:[#allocation6] sm:$0xff]   ;;  %vm149_vm1 = vcmask 1041408   ;;  %v294_v39 = vstv %s676_s8 }
  0x38   :  { %385 = vmatprep.subr.bf16.mxu0 %v533_v0  ;;  %395 = vmatprep.subr.bf16.mxu1 %v533_v0  ;;  %v428_v2 = vld [vmem:[#allocation6 + $0x8] sm:$0xff]   ;;  %v76_v3 = vld [vmem:[%s670_s2] sm:$0x3]  ;;  %v429_v6 = vld [vmem:[#allocation6 + $0x10] sm:$0xff]   ;;  %vm145_vm2 = vcmask 31744   ;;  %vm101_vm3 = vcmask 392192  }
  0x39   :  { %397 = vmatprep.mubr.msk.bf16.mxu1 %vm534_vm0, %v533_v0  ;;  %391 = vmatprep.mubr.msk.bf16.mxu0 %vm534_vm0, %v533_v0  ;;  %v151_v4 = vsel %vm149_vm1, %v76_v3, 0  ;;  %v72_v5 = vld [vmem:[%s668_s0] sm:$0xff]  ;;  %v431_v11 = vld [vmem:[%s673_s5 + $0x8] sm:$0xff]   ;;  %v432_v12 = vld [vmem:[%s673_s5 + $0x10] sm:$0xff]   ;;  %vm244_vm5 = vcmask 523264   ;;  %s535_s16 = smov [#allocation9]  }
  0x3a   :  { %386 = vmatpush3.bf16.msra.mxu0 %v427_v1  ;;  %396 = vmatpush3.bf16.msra.mxu1 %v151_v4  ;;  %v73_v7 = vpack.c.bf16 %v72_v5, %v72_v5  ;;  %v74_v8 = vld [vmem:[#allocation3] sm:$0xff]  ;;  %v433_v13 = vld [vmem:[%s673_s5 + $0x18] sm:$0xff]   ;;  %s349_s17 = sshll.u32 %s535_s16, 4  ;;  %vm341_vm7 = vcmask 57344   ;;  %s350_s17 = int_to_ptr.vmem [resolvable:$true] %s349_s17 }
  0x3b   :  { %387 = vmatprep.subr.bf16.mxu0 %v533_v0  ;;  %v430_v9 = vld [vmem:[%s673_s5] sm:$0xff]   ;;  %401 = vmatprep.subr.bf16.mxu1 %v533_v0  ;;  %v75_v10 = vpack.c.bf16 %v74_v8, %v74_v8  ;;  %s500_s18 = scalar_lea.vmem %s350_s17, 16  ;;  %s504_s19 = scalar_lea.vmem %s350_s17, 32 }
  0x3c   :  { %v364_v19 = vld [vmem:[#allocation8] ss:$0 sm:$0xff]  ;;  %p501_p10 = scmp.ne.s32.totalorder %s350_s17, %s500_s18  ;;  %p505_p11 = scmp.lt.s32.totalorder %s350_s17, %s350_s17 }
  0x3d   :  { %398 = vmatmul.mubr.msk.bf16.vlgmr.msra.gmra.mrb[0].mxu1 %vm145_vm2, %v73_v7  ;;  %v365_v28 = vld [vmem:[%s674_s6] ss:$0 sm:$0xff]  ;;  %p506_p12 = scmp.lt.s32.totalorder %s504_s19, %s500_s18 }
  0x3e   :  { %388 = vmatpush3.bf16.msra.mxu0 %v428_v2  ;;  %402 = vmatpush3.bf16.msra.mxu1 %v430_v9  ;;  %v291_v38 = vld [vmem:[%s675_s7] sm:$0x1] }
  0x3f   :  { %389 = vmatprep.subr.bf16.mxu0 %v533_v0  ;;  %409 = vmatprep.mubr.msk.bf16.mxu1 %vm534_vm0, %v533_v0  ;;  %p507_p13 = por %p506_p12, %p505_p11 }
  0x40   :  { %403 = vmatprep.subr.bf16.mxu1 %v533_v0 }
  0x41   :  { %p508_p0 = pnand %p507_p13, %p501_p10 }
  0x42   :  { %390 = vmatpush3.bf16.msra.mxu0 %v429_v6  ;;  %404 = vmatpush3.bf16.msra.mxu1 %v431_v11 }
  0x43   :  { %413 = vmatprep.subr.bf16.mxu0 %v533_v0  ;;  %405 = vmatprep.subr.bf16.mxu1 %v533_v0 }
  0x45   :  { %392 = vmatmul.mubr.msk.bf16.vlgmr.msra.gmra.mrb[0].mxu0 %vm101_vm3, %v75_v10 }
  0x46   :  { %415 = vmatprep.mubr.msk.bf16.mxu0 %vm534_vm0, %v533_v0  ;;  %406 = vmatpush3.bf16.msra.mxu1 %v432_v12 }
  0x47   :  { %407 = vmatprep.subr.bf16.mxu1 %v533_v0 }
  0x4a   :  { %408 = vmatpush3.bf16.msra.mxu1 %v433_v13 }
 0x110   :  { %v187_v14 = vpop.f32.mrb[0].mxu1 }
 0x111   :  { %v399_v15 = vpop.f32.mrb[1].mxu1 }
 0x112   :  { %v190_v16 = vpop.f32.mrb[2].mxu1 }
 0x113   :  { %v400_v17 = vpop.f32.mrb[3].mxu1 }
 0x118   :  { %v139_v18 = vpop.f32.mrb[0].mxu0 }
 0x119   :  { %v188_v20 = vadd.f32 %v187_v14, %v139_v18  ;;  %v393_v21 = vpop.f32.mrb[1].mxu0 }
 0x11a   :  { %v142_v22 = vpop.f32.mrb[2].mxu0 }
 0x11b   :  { %v200_v23 = vadd.f32 %v364_v19, %v188_v20  ;;  %v394_v24 = vpop.f32.mrb[3].mxu0 }
 0x11d   :  { %vm201_vm4 = vcmp.gt.f32.partialorder %v200_v23, 0.0  ;;  %v202_v25 = vmul.f32 0.01, %v200_v23 }
 0x11f   :  { %v203_v26 = vsel %vm201_vm4, %v200_v23, %v202_v25 }
 0x120   :  { %v204_v27 = vpack.c.bf16 %v203_v26, %v203_v26 }
 0x122   :  { %410 = vmatmul.mubr.msk.bf16.vlgmr.msra.gmra.mrb[4].mxu1 %vm244_vm5, %v204_v27 }
 0x1f5   :  { %v282_v29 = vpop.f32.mrb[4].mxu1 }
 0x1f6   :  { %v283_v30 = vadd.f32 %v365_v28, %v282_v29  ;;  %v411_v31 = vpop.f32.mrb[5].mxu1 }
 0x1f7   :  { %v285_v32 = vpop.f32.mrb[6].mxu1 }
 0x1f8   :  { %vm288_vm6 = vcmp.gt.f32.partialorder %v283_v30, 0.0  ;;  %v289_v33 = vmul.f32 0.01, %v283_v30  ;;  %v412_v34 = vpop.f32.mrb[7].mxu1 }
 0x1fa   :  { %v290_v35 = vsel %vm288_vm6, %v283_v30, %v289_v33 }
 0x1fb   :  { %v292_v36 = vpack.c.bf16 %v290_v35, %v290_v35 }
 0x1fd   :  { %v299_v37 = vsel %vm244_vm5, %v292_v36, 0 }
 0x1fe   :  { %414 = vmatpush3.bf16.xpose.msra.mxu0 %v299_v37 }
 0x205   :  { %416 = vmatmul.mubr.msk.bf16.vlgmr.msra.gmra.mrb[4].mxu0 %vm244_vm5, %v291_v38 }
 0x2d8   :  { %v335_v40 = vpop.f32.mrb[4].mxu0 }
 0x2d9   :  { %v336_v41 = vadd.f32 %v335_v40, %v294_v39  ;;  %v417_v42 = vpop.f32.mrb[5].mxu0 }
 0x2da   :  { %v338_v43 = vpop.f32.mrb[6].mxu0 }
 0x2db   :  { %v418_v44 = vpop.f32.mrb[7].mxu0  ;;  %342 = vst.msk [vmem:[#allocation9] sm:$0x1] %vm341_vm7, %v336_v41 }
 0x2dc   :  { %511 = shalt.err (!%p508_p0)
}
 0x2dd   :  { %s512_s20 = scalar_lea.hbm %s677_s9, 16 }
 0x2de   :  { %p513_p1 = scmp.ne.s32.totalorder %s677_s9, %s512_s20  ;;  %p516_p2 = scmp.lt.u32.totalorder %s512_s20, %s677_s9 }
 0x2e0   :  { %p518_p3 = pnand %p516_p2, %p513_p1 }
 0x2e2   :  { %521 = shalt.err (!%p518_p3)
}
 0x2e3   :  { %352 = dma.vmem_to_hbm [thread:$0]  %s350_s17, 16, %s677_s9, [#allocation5]  }
 0x2e4   :  { %526 = dma.done.wait [#allocation5], 16  }
 0x2e5   :  { %527 = vsyncadd [#allocation5], 4294967280 }
 0x2e6   :  { %356 = vsyncpa [#allocation4], 1 }
 0x2e7   :  { %357 = vsyncpa [#allocation7], 1 }
 0x2e8   :  { %358 = vsyncpa [#allocation5], 1 }

</bundles_post_ra>
